<compile_context>
chip_gen: v7x
topology: tpu7x:2x2x1
jax: 0.10.0
libtpu: 0.0.40
codegen_flags: <defaults>
</compile_context>

<pallas_src>
import jax
import jax.numpy as jnp
from jax.experimental import pallas as pl
from jax.experimental.pallas import tpu as pltpu

LANES = 128        # TPU vreg lane width
SUBLANES = 8       # TPU vreg sublane count
IN_FEATURES = 5    # native input feature width (kept un-padded)
NEG_FILL = -1e30   # padding for final-layer bias: exp(NEG_FILL - max) == 0


def policy_kernel(x_ref, w1_ref, b1_ref, w2_ref, b2_ref,
                  w3_ref, b3_ref, w4_ref, b4_ref, out_ref):
    """Fused MLP forward on one batch tile: 4x (bf16 matmul, f32 accum) + f32 bias,
    ReLU on the first three layers, exact numerically-stable softmax at the end."""
    x = x_ref[...].astype(jnp.bfloat16)

    # layer1: (tm,5) @ (5,128) + (1,128) -> ReLU
    h = jnp.dot(x, w1_ref[...], preferred_element_type=jnp.float32) + b1_ref[...]
    h = jnp.maximum(h, 0.0)

    # layer2: (tm,128) @ (128,128) + (1,128) -> ReLU
    h = jnp.dot(h.astype(jnp.bfloat16), w2_ref[...],
                preferred_element_type=jnp.float32) + b2_ref[...]
    h = jnp.maximum(h, 0.0)

    # layer3: (tm,128) @ (128,128) + (1,128) -> ReLU
    h = jnp.dot(h.astype(jnp.bfloat16), w3_ref[...],
                preferred_element_type=jnp.float32) + b3_ref[...]
    h = jnp.maximum(h, 0.0)

    # layer4: (tm,128) @ (128,OUT_PAD) + (1,OUT_PAD)  (no activation)
    logits = jnp.dot(h.astype(jnp.bfloat16), w4_ref[...],
                     preferred_element_type=jnp.float32) + b4_ref[...]

    # softmax over the (narrow) last dim; padded action lanes carry -1e30 bias -> exp==0,
    # so this equals softmax over the logical action lanes.  Exact divide so each row
    # sums to 1.0 to f32 precision.
    m = jnp.max(logits, axis=-1, keepdims=True)
    e = jnp.exp(logits - m)
    denom = jnp.sum(e, axis=-1, keepdims=True)
    out_ref[...] = (e / denom).astype(out_ref.dtype)


def _pad2d(a, rows, cols, fill=0.0):
    out = jnp.full((rows, cols), fill, dtype=a.dtype)
    return out.at[: a.shape[0], : a.shape[1]].set(a)


def _out_pad(action_size):
    return max(SUBLANES, pl.cdiv(action_size, SUBLANES) * SUBLANES)


def prepare_params(params, action_size):
    """One-time weight preprocessing (NOT per call).

    Weights -> bf16, lane-padded; biases stay f32 as (1, width) rows.  The final layer
    is padded only to round_up(action_size, 8) lanes, with -1e30 bias in padded lanes.
    """
    w1, b1, w2, b2, w3, b3, w4, b4 = params
    assert action_size >= 1 and w4.shape[1] == action_size
    ap = _out_pad(action_size)
    w1p = _pad2d(w1, IN_FEATURES, LANES).astype(jnp.bfloat16)   # (5,64)   -> (5,128)
    w2p = _pad2d(w2, LANES, LANES).astype(jnp.bfloat16)         # (64,32)  -> (128,128)
    w3p = _pad2d(w3, LANES, LANES).astype(jnp.bfloat16)         # (32,32)  -> (128,128)
    w4p = _pad2d(w4, LANES, ap).astype(jnp.bfloat16)            # (32,A)   -> (128,ap)
    b1p = _pad2d(b1.reshape(1, -1), 1, LANES)                   # (1,128) f32
    b2p = _pad2d(b2.reshape(1, -1), 1, LANES)                   # (1,128) f32
    b3p = _pad2d(b3.reshape(1, -1), 1, LANES)                   # (1,128) f32
    b4p = _pad2d(b4.reshape(1, -1), 1, ap, NEG_FILL)            # (1,ap)  f32, pad -1e30
    return (w1p, b1p, w2p, b2p, w3p, b3p, w4p, b4p)


def policy_forward(x, padded_params, action_size, *, block_b=1024):
    """Pallas forward. Batch is tiled along a parallel grid axis; weights use
    constant block-0 index_maps so Pallas keeps them resident in VMEM."""
    B, F = x.shape
    assert F == IN_FEATURES
    ap = _out_pad(action_size)

    # Grid/tile selection: right-size tm so batch padding is < 8 rows per tile, and
    # force an even >= 2-step grid when B >= 16 so megacore (v7x) uses both TCs.
    grid_n = pl.cdiv(B, block_b)
    if B >= 16:
        grid_n = max(2, 2 * pl.cdiv(grid_n, 2))
    tm = pl.cdiv(pl.cdiv(B, grid_n), SUBLANES) * SUBLANES
    b_pad = grid_n * tm
    if b_pad != B:
        x = jnp.pad(x, ((0, b_pad - B), (0, 0)))   # batch-axis pad only, when needed

    resident = lambda a: pl.BlockSpec(a.shape, lambda i: (0, 0))
    in_specs = [pl.BlockSpec((tm, IN_FEATURES), lambda i: (i, 0))]   # native 5-wide x
    in_specs += [resident(a) for a in padded_params]

    out = pl.pallas_call(
        policy_kernel,
        out_shape=jax.ShapeDtypeStruct((b_pad, ap), jnp.float32),
        grid=(grid_n,),
        in_specs=in_specs,
        out_specs=pl.BlockSpec((tm, ap), lambda i: (i, 0)),
        compiler_params=pltpu.CompilerParams(
            dimension_semantics=("parallel",)),
    )(x, *padded_params)

    # Drop batch / action-lane padding outside the kernel (only ap lanes were written).
    return out[:B, :action_size]


def init_params(key, action_size):
    """Deterministic init mimicking nn.Linear's uniform(-1/sqrt(fan_in), 1/sqrt(fan_in)).
    Weights stored as (in_features, out_features), so forward is y = x @ W + b."""
    dims = [(5, 64), (64, 32), (32, 32), (32, action_size)]
    params = []
    for fan_in, fan_out in dims:
        key, kw, kb = jax.random.split(key, 3)
        bound = 1.0 / (fan_in ** 0.5)
        w = jax.random.uniform(kw, (fan_in, fan_out), jnp.float32, -bound, bound)
        b = jax.random.uniform(kb, (fan_out,), jnp.float32, -bound, bound)
        params.extend([w, b])
    return tuple(params)


def reference_forward(x, params):
    w1, b1, w2, b2, w3, b3, w4, b4 = params
    h = jax.nn.relu(x @ w1 + b1)
    h = jax.nn.relu(h @ w2 + b2)
    h = jax.nn.relu(h @ w3 + b3)
    return jax.nn.softmax(h @ w4 + b4, axis=1)


if __name__ == "__main__":
    key = jax.random.PRNGKey(0)
    key, kx, kx2 = jax.random.split(key, 3)

    batch = 8
    action_size = 4  # small synthetic action space

    params = init_params(key, action_size)
    padded_params = prepare_params(params, action_size)

    # Small-batch path (single grid step).
    x = jax.random.normal(kx, (batch, 5), dtype=jnp.float32)
    out = jax.block_until_ready(policy_forward(x, padded_params, action_size))
    ref = reference_forward(x, params)
    assert out.shape == (batch, action_size)
    # bf16 matmul operands (f32 accumulation) vs f32 reference -> relaxed tolerance
    assert jnp.allclose(out, ref, atol=2e-2, rtol=2e-2), "mismatch vs reference (small batch)"
    # exact divide in the softmax -> rows sum to 1 to f32 precision
    assert jnp.allclose(jnp.sum(out, axis=1), jnp.ones((batch,)), atol=1e-5)

    # Larger batch exercising the tiled, parallel grid path (2 steps of 152 rows).
    x2 = jax.random.normal(kx2, (300, 5), dtype=jnp.float32)
    out2 = jax.block_until_ready(policy_forward(x2, padded_params, action_size))
    ref2 = reference_forward(x2, params)
    assert out2.shape == (300, action_size)
    assert jnp.allclose(out2, ref2, atol=2e-2, rtol=2e-2), "mismatch vs reference (tiled batch)"
    assert jnp.allclose(jnp.sum(out2, axis=1), jnp.ones((300,)), atol=1e-5)

    print("KERNEL_OK")
</pallas_src>

<mosaic_0001>
module attributes {stable_mosaic.version = 11 : i64} {
  func.func @policy_kernel(%arg0: i32, %arg1: memref<8x5xf32, #tpu.memory_space<vmem>>, %arg2: memref<5x128xbf16, #tpu.memory_space<vmem>>, %arg3: memref<1x128xf32, #tpu.memory_space<vmem>>, %arg4: memref<128x128xbf16, #tpu.memory_space<vmem>>, %arg5: memref<1x128xf32, #tpu.memory_space<vmem>>, %arg6: memref<128x128xbf16, #tpu.memory_space<vmem>>, %arg7: memref<1x128xf32, #tpu.memory_space<vmem>>, %arg8: memref<128x8xbf16, #tpu.memory_space<vmem>>, %arg9: memref<1x8xf32, #tpu.memory_space<vmem>>, %arg10: memref<8x8xf32, #tpu.memory_space<vmem>>) attributes {dimension_semantics = [#tpu.dimension_semantics<parallel>], iteration_bounds = array<i64: 1>, scalar_prefetch = 0 : i64, scratch_operands = 0 : i64, tpu.core_type = #tpu.core_type<tc>, window_params = [{transform_indices = @transform_0, window_bounds = array<i64: 8, 5>}, {pipeline_mode = #tpu.pipeline_mode<synchronous>, transform_indices = @transform_1, window_bounds = array<i64: 5, 128>}, {pipeline_mode = #tpu.pipeline_mode<synchronous>, transform_indices = @transform_2, window_bounds = array<i64: 1, 128>}, {pipeline_mode = #tpu.pipeline_mode<synchronous>, transform_indices = @transform_3, window_bounds = array<i64: 128, 128>}, {pipeline_mode = #tpu.pipeline_mode<synchronous>, transform_indices = @transform_4, window_bounds = array<i64: 1, 128>}, {pipeline_mode = #tpu.pipeline_mode<synchronous>, transform_indices = @transform_5, window_bounds = array<i64: 128, 128>}, {pipeline_mode = #tpu.pipeline_mode<synchronous>, transform_indices = @transform_6, window_bounds = array<i64: 1, 128>}, {pipeline_mode = #tpu.pipeline_mode<synchronous>, transform_indices = @transform_7, window_bounds = array<i64: 128, 8>}, {pipeline_mode = #tpu.pipeline_mode<synchronous>, transform_indices = @transform_8, window_bounds = array<i64: 1, 8>}, {transform_indices = @transform_9, window_bounds = array<i64: 8, 8>}]} {
    %c0 = arith.constant 0 : index
    %c0_0 = arith.constant 0 : index
    %0 = vector.load %arg1[%c0, %c0_0] : memref<8x5xf32, #tpu.memory_space<vmem>>, vector<8x5xf32>
    %1 = arith.truncf %0 : vector<8x5xf32> to vector<8x5xbf16>
    %c0_1 = arith.constant 0 : index
    %c0_2 = arith.constant 0 : index
    %2 = vector.load %arg2[%c0_1, %c0_2] : memref<5x128xbf16, #tpu.memory_space<vmem>>, vector<5x128xbf16>
    %cst = arith.constant dense<0.000000e+00> : vector<8x128xf32>
    %3 = tpu.matmul %1, %2, %cst {dimension_numbers = #tpu.dot_dimension_numbers<[1], [0], [0], [1], [0, 0, 1, 1], [], []>} : vector<8x5xbf16>, vector<5x128xbf16>, vector<8x128xf32> -> vector<8x128xf32>
    %c0_3 = arith.constant 0 : index
    %c0_4 = arith.constant 0 : index
    %4 = vector.load %arg3[%c0_3, %c0_4] : memref<1x128xf32, #tpu.memory_space<vmem>>, vector<1x128xf32>
    %5 = vector.broadcast %4 : vector<1x128xf32> to vector<8x128xf32>
    %6 = arith.addf %3, %5 : vector<8x128xf32>
    %cst_5 = arith.constant 0.000000e+00 : f32
    %7 = vector.broadcast %cst_5 : f32 to vector<8x128xf32>
    %8 = arith.maximumf %6, %7 : vector<8x128xf32>
    %9 = arith.truncf %8 : vector<8x128xf32> to vector<8x128xbf16>
    %c0_6 = arith.constant 0 : index
    %c0_7 = arith.constant 0 : index
    %10 = vector.load %arg4[%c0_6, %c0_7] : memref<128x128xbf16, #tpu.memory_space<vmem>>, vector<128x128xbf16>
    %cst_8 = arith.constant dense<0.000000e+00> : vector<8x128xf32>
    %11 = tpu.matmul %9, %10, %cst_8 {dimension_numbers = #tpu.dot_dimension_numbers<[1], [0], [0], [1], [0, 0, 1, 1], [], []>} : vector<8x128xbf16>, vector<128x128xbf16>, vector<8x128xf32> -> vector<8x128xf32>
    %c0_9 = arith.constant 0 : index
    %c0_10 = arith.constant 0 : index
    %12 = vector.load %arg5[%c0_9, %c0_10] : memref<1x128xf32, #tpu.memory_space<vmem>>, vector<1x128xf32>
    %13 = vector.broadcast %12 : vector<1x128xf32> to vector<8x128xf32>
    %14 = arith.addf %11, %13 : vector<8x128xf32>
    %cst_11 = arith.constant 0.000000e+00 : f32
    %15 = vector.broadcast %cst_11 : f32 to vector<8x128xf32>
    %16 = arith.maximumf %14, %15 : vector<8x128xf32>
    %17 = arith.truncf %16 : vector<8x128xf32> to vector<8x128xbf16>
    %c0_12 = arith.constant 0 : index
    %c0_13 = arith.constant 0 : index
    %18 = vector.load %arg6[%c0_12, %c0_13] : memref<128x128xbf16, #tpu.memory_space<vmem>>, vector<128x128xbf16>
    %cst_14 = arith.constant dense<0.000000e+00> : vector<8x128xf32>
    %19 = tpu.matmul %17, %18, %cst_14 {dimension_numbers = #tpu.dot_dimension_numbers<[1], [0], [0], [1], [0, 0, 1, 1], [], []>} : vector<8x128xbf16>, vector<128x128xbf16>, vector<8x128xf32> -> vector<8x128xf32>
    %c0_15 = arith.constant 0 : index
    %c0_16 = arith.constant 0 : index
    %20 = vector.load %arg7[%c0_15, %c0_16] : memref<1x128xf32, #tpu.memory_space<vmem>>, vector<1x128xf32>
    %21 = vector.broadcast %20 : vector<1x128xf32> to vector<8x128xf32>
    %22 = arith.addf %19, %21 : vector<8x128xf32>
    %cst_17 = arith.constant 0.000000e+00 : f32
    %23 = vector.broadcast %cst_17 : f32 to vector<8x128xf32>
    %24 = arith.maximumf %22, %23 : vector<8x128xf32>
    %25 = arith.truncf %24 : vector<8x128xf32> to vector<8x128xbf16>
    %c0_18 = arith.constant 0 : index
    %c0_19 = arith.constant 0 : index
    %26 = vector.load %arg8[%c0_18, %c0_19] : memref<128x8xbf16, #tpu.memory_space<vmem>>, vector<128x8xbf16>
    %cst_20 = arith.constant dense<0.000000e+00> : vector<8x8xf32>
    %27 = tpu.matmul %25, %26, %cst_20 {dimension_numbers = #tpu.dot_dimension_numbers<[1], [0], [0], [1], [0, 0, 1, 1], [], []>} : vector<8x128xbf16>, vector<128x8xbf16>, vector<8x8xf32> -> vector<8x8xf32>
    %c0_21 = arith.constant 0 : index
    %c0_22 = arith.constant 0 : index
    %28 = vector.load %arg9[%c0_21, %c0_22] : memref<1x8xf32, #tpu.memory_space<vmem>>, vector<1x8xf32>
    %29 = vector.broadcast %28 : vector<1x8xf32> to vector<8x8xf32>
    %30 = arith.addf %27, %29 : vector<8x8xf32>
    %cst_23 = arith.constant dense<0xFF800000> : vector<8xf32>
    %31 = vector.multi_reduction <maximumf>, %30, %cst_23 [1] : vector<8x8xf32> to vector<8xf32>
    %32 = vector.shape_cast %31 : vector<8xf32> to vector<8x1xf32>
    %33 = vector.broadcast %32 : vector<8x1xf32> to vector<8x8xf32>
    %34 = arith.subf %30, %33 : vector<8x8xf32>
    %35 = math.exp %34 : vector<8x8xf32>
    %cst_24 = arith.constant dense<0.000000e+00> : vector<8xf32>
    %36 = vector.multi_reduction <add>, %35, %cst_24 [1] : vector<8x8xf32> to vector<8xf32>
    %37 = vector.shape_cast %36 : vector<8xf32> to vector<8x1xf32>
    %38 = vector.broadcast %37 : vector<8x1xf32> to vector<8x8xf32>
    %39 = arith.divf %35, %38 : vector<8x8xf32>
    %c0_25 = arith.constant 0 : index
    %c0_26 = arith.constant 0 : index
    %40 = vector.load %arg10[%c0_25, %c0_26] : memref<8x8xf32, #tpu.memory_space<vmem>>, vector<8x8xf32>
    tpu.vector_store %arg10[%c0_25, %c0_26], %39 {strides = array<i32>} : memref<8x8xf32, #tpu.memory_space<vmem>>, vector<8x8xf32>,
    return
  }
  func.func @transform_0(%arg0: i32) -> (i32, i32) {
    %c0_i32 = arith.constant 0 : i32
    %c0_i32_0 = arith.constant 0 : i32
    return %arg0, %c0_i32 : i32, i32
  }
  func.func @transform_1(%arg0: i32) -> (i32, i32) {
    %c0_i32 = arith.constant 0 : i32
    %c0_i32_0 = arith.constant 0 : i32
    %c0_i32_1 = arith.constant 0 : i32
    return %c0_i32, %c0_i32_0 : i32, i32
  }
  func.func @transform_2(%arg0: i32) -> (i32, i32) {
    %c0_i32 = arith.constant 0 : i32
    %c0_i32_0 = arith.constant 0 : i32
    %c0_i32_1 = arith.constant 0 : i32
    return %c0_i32, %c0_i32_0 : i32, i32
  }
  func.func @transform_3(%arg0: i32) -> (i32, i32) {
    %c0_i32 = arith.constant 0 : i32
    %c0_i32_0 = arith.constant 0 : i32
    %c0_i32_1 = arith.constant 0 : i32
    return %c0_i32, %c0_i32_0 : i32, i32
  }
  func.func @transform_4(%arg0: i32) -> (i32, i32) {
    %c0_i32 = arith.constant 0 : i32
    %c0_i32_0 = arith.constant 0 : i32
    %c0_i32_1 = arith.constant 0 : i32
    return %c0_i32, %c0_i32_0 : i32, i32
  }
  func.func @transform_5(%arg0: i32) -> (i32, i32) {
    %c0_i32 = arith.constant 0 : i32
    %c0_i32_0 = arith.constant 0 : i32
    %c0_i32_1 = arith.constant 0 : i32
    return %c0_i32, %c0_i32_0 : i32, i32
  }
  func.func @transform_6(%arg0: i32) -> (i32, i32) {
    %c0_i32 = arith.constant 0 : i32
    %c0_i32_0 = arith.constant 0 : i32
    %c0_i32_1 = arith.constant 0 : i32
    return %c0_i32, %c0_i32_0 : i32, i32
  }
  func.func @transform_7(%arg0: i32) -> (i32, i32) {
    %c0_i32 = arith.constant 0 : i32
    %c0_i32_0 = arith.constant 0 : i32
    %c0_i32_1 = arith.constant 0 : i32
    return %c0_i32, %c0_i32_0 : i32, i32
  }
  func.func @transform_8(%arg0: i32) -> (i32, i32) {
    %c0_i32 = arith.constant 0 : i32
    %c0_i32_0 = arith.constant 0 : i32
    %c0_i32_1 = arith.constant 0 : i32
    return %c0_i32, %c0_i32_0 : i32, i32
  }
  func.func @transform_9(%arg0: i32) -> (i32, i32) {
    %c0_i32 = arith.constant 0 : i32
    %c0_i32_0 = arith.constant 0 : i32
    return %arg0, %c0_i32 : i32, i32
  }
}

</mosaic_0001>

<bundles_post_ra>
// kernel: tpu_custom_call.1
= control target key start
LH: loop header
LB: loop body
LE: loop exit
PB: predicated region body
PF: predicated region fallthrough
CT: control target
= control target key end

     0   :  { %14 = vsyncpa [#allocation3], 0  ;;  %s866_s0 = inlined_call_operand.vmem [shape: f32[8,5], index: 0, kind: input, shape index: {}]   ;;  %s867_s1 = inlined_call_operand.vmem [shape: bf16[5,128], index: 1, kind: input, shape index: {}]   ;;  %s868_s2 = inlined_call_operand.vmem [shape: f32[1,128], index: 2, kind: input, shape index: {}]   ;;  %s869_s3 = inlined_call_operand.vmem [shape: bf16[128,128], index: 3, kind: input, shape index: {}]   ;;  %s870_s4 = inlined_call_operand.vmem [shape: f32[1,128], index: 4, kind: input, shape index: {}]   ;;  %s871_s5 = inlined_call_operand.hbm [shape: bf16[128,128], index: 5, kind: input, shape index: {}]   ;;  %s872_s6 = inlined_call_operand.vmem [shape: f32[1,128], index: 6, kind: input, shape index: {}]   ;;  %s873_s7 = inlined_call_operand.vmem [shape: bf16[128,8], index: 7, kind: input, shape index: {}]   ;;  %s874_s8 = inlined_call_operand.vmem [shape: f32[1,8], index: 8, kind: input, shape index: {}]   ;;  %s875_s9 = inlined_call_operand.hbm [shape: f32[8,8], index: 9, kind: output, shape index: {}]  }
   0x1   :  { %15 = vsyncpa [#allocation4], 0  ;;  %s683_s30 = smov [#allocation2]   ;;  %s635_s13 = scalar_lea.hbm %s871_s5, 1024 }
   0x2   :  { %s31_s10 = sshll.u32 %s683_s30, 4  ;;  %p636_p0 = scmp.ne.s32.totalorder %s871_s5, %s635_s13  ;;  %s32_s10 = int_to_ptr.vmem [resolvable:$true] %s31_s10 }
   0x3   :  { %p639_p1 = scmp.lt.u32.totalorder %s635_s13, %s871_s5 }
   0x5   :  { %p641_p2 = pnand %p639_p1, %p636_p0 }
   0x7   :  { %644 = shalt.err (!%p641_p2)
}
   0x8   :  { %s645_s18 = scalar_lea.vmem %s32_s10, 1024  ;;  %p650_p4 = scmp.lt.s32.totalorder %s32_s10, %s32_s10 }
   0x9   :  { %p646_p3 = scmp.ne.s32.totalorder %s32_s10, %s645_s18  ;;  %p651_p5 = scmp.lt.s32.totalorder %s645_s18, %s645_s18 }
   0xb   :  { %p652_p6 = por %p651_p5, %p650_p4 }
   0xd   :  { %p653_p7 = pnand %p652_p6, %p646_p3 }
   0xf   :  { %656 = shalt.err (!%p653_p7)
}
  0x10   :  { %s684_s19 = smov 64   ;;  %s685_s20 = smov 4  }
  0x11   :  { %37 = dma.hbm_to_vmem [thread:$0]  %s871_s5, 1024, %s32_s10, [#allocation3], %s684_s19, %s684_s19, %s685_s20  }
  0x12   :  { %679 = dma.done.wait [#allocation3], 1024  }
  0x13   :  { %680 = vsyncadd [#allocation3], 4294966272  ;;  %vm62_vm0 = vcmask 1041408   ;;  %v686_v0 = vmov 0.0   ;;  %vm63_vm1 = vcmask 1042432   ;;  %v687_v1 = vmov 65535  }
  0x14   :  { %534 = vmatprep.subr.bf16.mxu0 %v686_v0  ;;  %540 = vmatprep.subr.bf16.mxu1 %v686_v0  ;;  %v64_v2 = vsel %vm62_vm0, 4294967295, %v687_v1  ;;  %vm688_vm2 = vmmov 0   ;;  %v50_v4 = vld [vmem:[%s867_s1] sm:$0x7]  ;;  %vm58_vm3 = vcmask 39936   ;;  %v608_v9 = vld [vmem:[%s869_s3 + $0x8] sm:$0xff]  }
  0x15   :  { %536 = vmatprep.mubr.msk.bf16.mxu0 %vm688_vm2, %v686_v0  ;;  %556 = vmatprep.mubr.msk.bf16.mxu1 %vm688_vm2, %v686_v0  ;;  %v65_v3 = vsel %vm63_vm1, %v64_v2, 0  ;;  %v48_v5 = vld [vmem:[%s866_s0] sm:$0xff]  ;;  %v609_v10 = vld [vmem:[%s869_s3 + $0x10] sm:$0xff]   ;;  %v610_v11 = vld [vmem:[%s869_s3 + $0x18] sm:$0xff]   ;;  %vm448_vm4 = vcmask 64512  }
  0x16   :  { %v67_v6 = vand.u32 %v65_v3, %v50_v4  ;;  %v607_v7 = vld [vmem:[%s869_s3] sm:$0xff]   ;;  %v49_v8 = vpack.c.bf16 %v48_v5, %v48_v5  ;;  %v612_v13 = vld [vmem:[%s869_s3 + $0x28] sm:$0xff]   ;;  %v613_v14 = vld [vmem:[%s869_s3 + $0x30] sm:$0xff]  }
  0x17   :  { %541 = vmatpush3.bf16.msra.mxu1 %v607_v7  ;;  %v611_v12 = vld [vmem:[%s869_s3 + $0x20] sm:$0xff]   ;;  %v614_v15 = vld [vmem:[%s869_s3 + $0x38] sm:$0xff]   ;;  %v616_v17 = vld [vmem:[#allocation2 + $0x8] sm:$0xff]  }
  0x18   :  { %535 = vmatpush3.bf16.msra.mxu0 %v67_v6  ;;  %542 = vmatprep.subr.bf16.mxu1 %v686_v0  ;;  %v615_v16 = vld [vmem:[#allocation2] sm:$0xff]   ;;  %v617_v18 = vld [vmem:[#allocation2 + $0x10] sm:$0xff]   ;;  %v618_v19 = vld [vmem:[#allocation2 + $0x18] sm:$0xff]  }
  0x19   :  { %560 = vmatprep.subr.bf16.mxu0 %v686_v0  ;;  %v619_v20 = vld [vmem:[#allocation2 + $0x20] sm:$0xff]   ;;  %v620_v21 = vld [vmem:[#allocation2 + $0x28] sm:$0xff]   ;;  %v621_v30 = vld [vmem:[#allocation2 + $0x30] sm:$0xff]  }
  0x1a   :  { %v476_v22 = vld [vmem:[%s868_s2] ss:$0 sm:$0xff]  ;;  %v622_v31 = vld [vmem:[#allocation2 + $0x38] sm:$0xff]   ;;  %v624_v33 = vld [vmem:[%s873_s7 + $0x8] sm:$0xff]  }
  0x1b   :  { %537 = vmatmul.mubr.msk.bf16.vlgmr.msra.gmra.mrb[0].mxu0 %vm58_vm3, %v49_v8  ;;  %543 = vmatpush3.bf16.msra.mxu1 %v608_v9  ;;  %v623_v32 = vld [vmem:[%s873_s7] sm:$0xff]   ;;  %v625_v34 = vld [vmem:[%s873_s7 + $0x10] sm:$0xff]   ;;  %v626_v35 = vld [vmem:[%s873_s7 + $0x18] sm:$0xff]  }
  0x1c   :  { %576 = vmatprep.mubr.msk.bf16.mxu0 %vm688_vm2, %v686_v0  ;;  %544 = vmatprep.subr.bf16.mxu1 %v686_v0  ;;  %v627_v36 = vld [vmem:[%s873_s7 + $0x20] sm:$0xff]   ;;  %v628_v37 = vld [vmem:[%s873_s7 + $0x28] sm:$0xff]   ;;  %v629_v46 = vld [vmem:[%s873_s7 + $0x30] sm:$0xff]  }
  0x1d   :  { %561 = vmatpush3.bf16.msra.mxu0 %v615_v16  ;;  %v478_v38 = vld [vmem:[%s870_s4] ss:$0 sm:$0xff]  ;;  %v630_v47 = vld [vmem:[%s873_s7 + $0x38] sm:$0xff]  }
  0x1e   :  { %562 = vmatprep.subr.bf16.mxu0 %v686_v0  ;;  %v487_v48 = vld [vmem:[%s872_s6] ss:$0 sm:$0xff]  ;;  %s689_s6 = smov [#allocation5]  }
  0x1f   :  { %545 = vmatpush3.bf16.msra.mxu1 %v609_v10  ;;  %v496_v56 = vld [vmem:[%s874_s8] ss:$0 sm:$0xff]  ;;  %s467_s7 = sshll.u32 %s689_s6, 4  ;;  %s468_s7 = int_to_ptr.vmem [resolvable:$true] %s467_s7 }
  0x20   :  { %546 = vmatprep.subr.bf16.mxu1 %v686_v0  ;;  %s657_s8 = scalar_lea.vmem %s468_s7, 128  ;;  %p662_p9 = scmp.lt.s32.totalorder %s468_s7, %s468_s7 }
  0x21   :  { %563 = vmatpush3.bf16.msra.mxu0 %v616_v17  ;;  %p658_p8 = scmp.ne.s32.totalorder %s468_s7, %s657_s8  ;;  %p663_p10 = scmp.lt.s32.totalorder %s657_s8, %s657_s8 }
  0x22   :  { %564 = vmatprep.subr.bf16.mxu0 %v686_v0 }
  0x23   :  { %547 = vmatpush3.bf16.msra.mxu1 %v610_v11  ;;  %p664_p11 = por %p663_p10, %p662_p9 }
  0x24   :  { %548 = vmatprep.subr.bf16.mxu1 %v686_v0 }
  0x25   :  { %565 = vmatpush3.bf16.msra.mxu0 %v617_v18  ;;  %p665_p12 = pnand %p664_p11, %p658_p8 }
  0x26   :  { %566 = vmatprep.subr.bf16.mxu0 %v686_v0 }
  0x27   :  { %549 = vmatpush3.bf16.msra.mxu1 %v611_v12 }
  0x28   :  { %550 = vmatprep.subr.bf16.mxu1 %v686_v0 }
  0x29   :  { %567 = vmatpush3.bf16.msra.mxu0 %v618_v19 }
  0x2a   :  { %568 = vmatprep.subr.bf16.mxu0 %v686_v0 }
  0x2b   :  { %551 = vmatpush3.bf16.msra.mxu1 %v612_v13 }
  0x2c   :  { %552 = vmatprep.subr.bf16.mxu1 %v686_v0 }
  0x2d   :  { %569 = vmatpush3.bf16.msra.mxu0 %v619_v20 }
  0x2e   :  { %570 = vmatprep.subr.bf16.mxu0 %v686_v0 }
  0x2f   :  { %553 = vmatpush3.bf16.msra.mxu1 %v613_v14 }
  0x30   :  { %554 = vmatprep.subr.bf16.mxu1 %v686_v0 }
  0x31   :  { %571 = vmatpush3.bf16.msra.mxu0 %v620_v21 }
  0x32   :  { %572 = vmatprep.subr.bf16.mxu0 %v686_v0 }
  0x33   :  { %555 = vmatpush3.bf16.msra.mxu1 %v614_v15 }
  0x34   :  { %580 = vmatprep.subr.bf16.mxu1 %v686_v0 }
  0x35   :  { %573 = vmatpush3.bf16.msra.mxu0 %v621_v30 }
  0x36   :  { %574 = vmatprep.subr.bf16.mxu0 %v686_v0 }
  0x39   :  { %575 = vmatpush3.bf16.msra.mxu0 %v622_v31 }
  0xee   :  { %v103_v23 = vpop.f32.mrb[0].mxu0 }
  0xef   :  { %v104_v24 = vadd.f32 %v476_v22, %v103_v23  ;;  %v538_v25 = vpop.f32.mrb[1].mxu0 }
  0xf0   :  { %v106_v26 = vpop.f32.mrb[2].mxu0 }
  0xf1   :  { %v109_v27 = vmax.f32 %v104_v24, 0.0  ;;  %v539_v28 = vpop.f32.mrb[3].mxu0 }
  0xf3   :  { %v110_v29 = vpack.c.bf16 %v109_v27, %v109_v27 }
  0xf5   :  { %557 = vmatmul.mubr.bf16.vlgmr.msra.gmra.mrb[0].mxu1 %v110_v29 }
  0xf6   :  { %596 = vmatprep.mubr.msk.bf16.mxu1 %vm688_vm2, %v686_v0  ;;  %581 = vmatpush3.bf16.msra.mxu1 %v623_v32 }
  0xf7   :  { %582 = vmatprep.subr.bf16.mxu1 %v686_v0 }
  0xfa   :  { %583 = vmatpush3.bf16.msra.mxu1 %v624_v33 }
  0xfb   :  { %584 = vmatprep.subr.bf16.mxu1 %v686_v0 }
  0xfe   :  { %585 = vmatpush3.bf16.msra.mxu1 %v625_v34 }
  0xff   :  { %586 = vmatprep.subr.bf16.mxu1 %v686_v0 }
 0x102   :  { %587 = vmatpush3.bf16.msra.mxu1 %v626_v35 }
 0x103   :  { %588 = vmatprep.subr.bf16.mxu1 %v686_v0 }
 0x106   :  { %589 = vmatpush3.bf16.msra.mxu1 %v627_v36 }
 0x107   :  { %590 = vmatprep.subr.bf16.mxu1 %v686_v0 }
 0x10a   :  { %591 = vmatpush3.bf16.msra.mxu1 %v628_v37 }
 0x10b   :  { %592 = vmatprep.subr.bf16.mxu1 %v686_v0 }
 0x10e   :  { %593 = vmatpush3.bf16.msra.mxu1 %v629_v46 }
 0x10f   :  { %594 = vmatprep.subr.bf16.mxu1 %v686_v0 }
 0x112   :  { %595 = vmatpush3.bf16.msra.mxu1 %v630_v47 }
 0x1c8   :  { %v216_v39 = vpop.f32.mrb[0].mxu1 }
 0x1c9   :  { %v217_v40 = vadd.f32 %v478_v38, %v216_v39  ;;  %v558_v41 = vpop.f32.mrb[1].mxu1 }
 0x1ca   :  { %v219_v42 = vpop.f32.mrb[2].mxu1 }
 0x1cb   :  { %v222_v43 = vmax.f32 %v217_v40, 0.0  ;;  %v559_v44 = vpop.f32.mrb[3].mxu1 }
 0x1cd   :  { %v223_v45 = vpack.c.bf16 %v222_v43, %v222_v43 }
 0x1cf   :  { %577 = vmatmul.mubr.bf16.vlgmr.msra.gmra.mrb[4].mxu0 %v223_v45 }
 0x2a2   :  { %v329_v49 = vpop.f32.mrb[4].mxu0 }
 0x2a3   :  { %v330_v50 = vadd.f32 %v487_v48, %v329_v49  ;;  %v578_v51 = vpop.f32.mrb[5].mxu0 }
 0x2a4   :  { %v332_v52 = vpop.f32.mrb[6].mxu0 }
 0x2a5   :  { %v335_v53 = vmax.f32 %v330_v50, 0.0  ;;  %v579_v54 = vpop.f32.mrb[7].mxu0 }
 0x2a7   :  { %v336_v55 = vpack.c.bf16 %v335_v53, %v335_v53 }
 0x2a9   :  { %597 = vmatmul.mubr.bf16.vlgmr.msra.gmra.mrb[4].mxu1 %v336_v55 }
 0x37c   :  { %v442_v57 = vpop.f32.mrb[4].mxu1 }
 0x37d   :  { %v443_v58 = vadd.f32 %v496_v56, %v442_v57  ;;  %v598_v59 = vpop.f32.mrb[5].mxu1 }
 0x37e   :  { %v445_v60 = vpop.f32.mrb[6].mxu1 }
 0x37f   :  { %v599_v61 = vpop.f32.mrb[7].mxu1  ;;  %v449_v62 = vsel %vm448_vm4, %v443_v58, -inf }
 0x380   :  { %450 = vmax.xlane.f32.xlu0 %v449_v62 }
 0x40d   :  { %v451_v63 = vpop.xlane.xlu0 %450 }
 0x40e   :  { %v452_v0 = vsub.f32 %v443_v58, %v451_v63 }
 0x410   :  { %v453_v1 = vmul.f32 1.442695, %v452_v0 }
 0x412   :  { %631 = vpow2.f32 %v453_v1 }
 0x41c   :  { %v632_v2 = vpop.eup %631 }
 0x41d   :  { %v455_v3 = vsel %vm448_vm4, %v632_v2, 0.0 }
 0x41e   :  { %456 = vadd.xlane.f32.xlu0 %v455_v3 }
 0x4ab   :  { %v457_v4 = vpop.xlane.xlu0 %456 }
 0x4ac   :  { %633 = vrcp.f32 %v457_v4 }
 0x4b6   :  { %v634_v5 = vpop.eup %633 }
 0x4b7   :  { %v459_v6 = vmul.f32 %v634_v5, %v632_v2 }
 0x4b9   :  { %460 = vst.msk [vmem:[#allocation5] sm:$0xff] %vm448_vm4, %v459_v6 }
 0x4ba   :  { %668 = shalt.err (!%p665_p12)
}
 0x4bb   :  { %s669_s18 = scalar_lea.hbm %s875_s9, 128 }
 0x4bc   :  { %p670_p13 = scmp.ne.s32.totalorder %s875_s9, %s669_s18  ;;  %p673_p0 = scmp.lt.u32.totalorder %s669_s18, %s875_s9 }
 0x4be   :  { %p675_p1 = pnand %p673_p0, %p670_p13 }
 0x4c0   :  { %678 = shalt.err (!%p675_p1)
}
 0x4c1   :  { %470 = dma.vmem_to_hbm [thread:$0]  %s468_s7, 128, %s875_s9, [#allocation4]  }
 0x4c2   :  { %681 = dma.done.wait [#allocation4], 128  }
 0x4c3   :  { %682 = vsyncadd [#allocation4], 4294967168 }
 0x4c4   :  { %474 = vsyncpa [#allocation3], 1 }
 0x4c5   :  { %475 = vsyncpa [#allocation4], 1 }

</bundles_post_ra>
